<compile_context>
chip_gen: v7x
topology: tpu7x:2x2x1
jax: 0.10.0
libtpu: 0.0.40
codegen_flags: <defaults>
</compile_context>

<pallas_src>
import functools

import jax
import jax.numpy as jnp
from jax.experimental import pallas as pl
from jax.experimental.pallas import tpu as pltpu

ALPHA = 0.25
GAMMA = 2.0
# TODO(synk): per-class `weight` tensor and reduction='none'/'sum' paths not implemented
#             (module defaults are weight=None, reduction='mean').


def _cdiv(a: int, b: int) -> int:
    return -(-a // b)


def _focal_loss_kernel(logits_ref, targets_ref, out_ref, *, tile_rows, n_true, alpha, gamma):
    # logits_ref: (T, C) float, targets_ref: (T, 1) int32, out_ref: (1, 1, 128) float32
    i = pl.program_id(0)

    # f32 math (v5e has no bf16 VPU/EUP; the cast is hidden under the DMA on v6e/v7x).
    x = logits_ref[...].astype(jnp.float32)                               # (T, C)
    t = targets_ref[...]                                                  # (T, 1) int32

    # cross_entropy(reduction='none'): ce_i = logsumexp(x_i) - x_i[t_i]
    m = jnp.max(x, axis=-1, keepdims=True)                                # (T, 1)
    lse = m + jnp.log(jnp.sum(jnp.exp(x - m), axis=-1, keepdims=True))    # (T, 1)

    cls_iota = jax.lax.broadcasted_iota(jnp.int32, x.shape, 1)            # (T, C)
    onehot = cls_iota == t                                                # (T, C) bool
    tgt_logit = jnp.sum(jnp.where(onehot, x, 0.0), axis=-1, keepdims=True)  # (T, 1)

    ce = lse - tgt_logit                                                  # (T, 1)
    pt = jnp.exp(-ce)                                                     # (T, 1)
    omp = 1.0 - pt                                                        # (T, 1)
    if gamma == 2.0:
        focal = alpha * omp * omp * ce          # exact; two VPU multiplies, no pow()/log(0)
    else:
        focal = alpha * jnp.power(jnp.maximum(omp, 0.0), gamma) * ce

    # Ragged last tile: the un-DMA'd VMEM rows hold stale data.  All math above is strictly
    # per-row, so masking here (the LAST op before the reduction) is sufficient; the
    # wrapper never pads the inputs.  Skipped entirely when every tile is full.
    if n_true % tile_rows != 0:
        row_iota = jax.lax.broadcasted_iota(jnp.int32, focal.shape, 0)    # (T, 1)
        focal = jnp.where(i * tile_rows + row_iota < n_true, focal, 0.0)

    # Per-tile partial sum, broadcast across a lane-dense (1, 1, 128) output block.
    out_ref[...] = jnp.full(out_ref.shape, jnp.sum(focal), dtype=jnp.float32)


def _pick_tile_rows(n: int, c: int, itemsize: int) -> int:
    """Row-tile size.

    Per-row pipelined footprint: 2x double-buffered logits tile + ~6 C-wide f32
    temporaries + 2x double-buffered (T,1) targets tile (lane-padded to 128) + ~6
    lane-padded (T,1) per-row f32 temporaries.  Kept under a 14 MiB working-set budget
    (well below the 32 MiB scoped-VMEM default on all generations, including v7x's
    64 MiB-physical TCs), while targeting a multi-MiB logits block so the ~0.35 us
    per-grid-step overhead is amortized.
    """
    per_row = 2 * c * itemsize + 6 * c * 4 + 2 * 128 * 4 + 6 * 128 * 4
    budget = 14 * 1024 * 1024
    if 8 * per_row > budget:
        # TODO(synk): add a C-axis ("arbitrary") grid with streaming logsumexp /
        # target-logit accumulation for very large class counts.
        raise ValueError(f"C={c} classes exceed the single-C-block VMEM budget")

    target_block_bytes = 4 * 1024 * 1024            # per-buffer logits block target
    t = min(target_block_bytes // (c * itemsize), budget // per_row)
    if n >= 16:
        # v7x megacore: keep >= 2 row tiles so dimension_semantics=("parallel",) actually
        # shards the grid across both TensorCores (no effect on single-TC v5e/v6e).
        t = min(t, _cdiv(_cdiv(n, 2), 8) * 8)
    t = max(8, (t // 8) * 8)
    return int(min(t, _cdiv(n, 8) * 8))             # never bigger than the (8-rounded) N


def focal_loss(logits: jax.Array, targets: jax.Array,
               *, alpha: float = ALPHA, gamma: float = GAMMA) -> jax.Array:
    """logits: (N, C) float (f32 or bf16, read as-is); targets: (N,) integer class indices.

    Returns the scalar mean focal loss (float32), matching the PyTorch module with
    alpha=0.25, gamma=2.0, weight=None, reduction='mean'.  Assumes 0 <= targets < C.
    """
    n, c = logits.shape
    itemsize = jnp.dtype(logits.dtype).itemsize

    tile_rows = _pick_tile_rows(n, c, itemsize)
    num_tiles = _cdiv(n, tile_rows)

    # No wrapper-side padding / upcasting: the ragged last tile is masked in-kernel, so we
    # never pay an extra HBM pass to materialize a padded (or widened) copy of the logits.
    tgt = targets.astype(jnp.int32).reshape(n, 1)

    kernel = functools.partial(
        _focal_loss_kernel,
        tile_rows=tile_rows, n_true=n, alpha=float(alpha), gamma=float(gamma),
    )

    partials = pl.pallas_call(
        kernel,
        out_shape=jax.ShapeDtypeStruct((num_tiles, 1, 128), jnp.float32),
        grid=(num_tiles,),
        in_specs=[
            pl.BlockSpec((tile_rows, c), lambda i: (i, 0)),
            pl.BlockSpec((tile_rows, 1), lambda i: (i, 0)),
        ],
        out_specs=pl.BlockSpec((1, 1, 128), lambda i: (i, 0, 0)),
        compiler_params=pltpu.CompilerParams(
            dimension_semantics=("parallel",),          # independent row tiles (2 TCs on v7x)
            vmem_limit_bytes=32 * 1024 * 1024,          # safe ceiling on v7x; fine on v5e/v6e
        ),
        cost_estimate=pl.CostEstimate(
            flops=6 * n * c,
            transcendentals=n * c + 3 * n,               # exp per element + exp/log per row
            bytes_accessed=n * c * itemsize + n * 4 + num_tiles * 128 * 4,
        ),
    )(logits, tgt)

    # Lane 0 of each tile's block holds that tile's partial sum; mean over the true N.
    return jnp.sum(partials[:, 0, 0]) / jnp.float32(n)


def _reference_focal_loss(logits, targets, alpha=ALPHA, gamma=GAMMA):
    # Pure-JAX reference mirroring the PyTorch module.
    logits = logits.astype(jnp.float32)
    lse = jax.scipy.special.logsumexp(logits, axis=-1)
    tgt = jnp.take_along_axis(logits, targets[:, None].astype(jnp.int32), axis=-1)[:, 0]
    ce = lse - tgt
    pt = jnp.exp(-ce)
    fl = alpha * (1.0 - pt) ** gamma * ce
    return jnp.mean(fl)


if __name__ == "__main__":
    key = jax.random.PRNGKey(0)
    k_logits, k_targets = jax.random.split(key)

    N, C = 8, 4  # small shapes: batch=8 samples, 4 classes
    logits = jax.random.normal(k_logits, (N, C), dtype=jnp.float32)
    targets = jax.random.randint(k_targets, (N,), 0, C, dtype=jnp.int32)

    loss = jax.block_until_ready(focal_loss(logits, targets))
    ref = jax.block_until_ready(_reference_focal_loss(logits, targets))
    assert jnp.allclose(loss, ref, rtol=1e-5, atol=1e-6), (loss, ref)

    # Also exercise the multi-tile / ragged (un-padded) path: N not a multiple of tile_rows.
    N2, C2 = 300, 10
    k1, k2 = jax.random.split(jax.random.PRNGKey(1))
    logits2 = jax.random.normal(k1, (N2, C2), dtype=jnp.float32)
    targets2 = jax.random.randint(k2, (N2,), 0, C2, dtype=jnp.int32)
    loss2 = jax.block_until_ready(focal_loss(logits2, targets2))
    ref2 = jax.block_until_ready(_reference_focal_loss(logits2, targets2))
    assert jnp.allclose(loss2, ref2, rtol=1e-5, atol=1e-6), (loss2, ref2)

    print("KERNEL_OK")
</pallas_src>

<mosaic_0001>
module attributes {stable_mosaic.version = 11 : i64} {
  func.func @_focal_loss_kernel(%arg0: i32, %arg1: memref<8x4xf32, #tpu.memory_space<vmem>>, %arg2: memref<8x1xi32, #tpu.memory_space<vmem>>, %arg3: memref<1x1x128xf32, #tpu.memory_space<vmem>>) attributes {dimension_semantics = [#tpu.dimension_semantics<parallel>], iteration_bounds = array<i64: 1>, scalar_prefetch = 0 : i64, scratch_operands = 0 : i64, tpu.core_type = #tpu.core_type<tc>, window_params = [{transform_indices = @transform_0, window_bounds = array<i64: 8, 4>}, {transform_indices = @transform_1, window_bounds = array<i64: 8, 1>}, {transform_indices = @transform_2, window_bounds = array<i64: 1, 1, 128>}]} {
    %c0 = arith.constant 0 : index
    %c0_0 = arith.constant 0 : index
    %0 = vector.load %arg1[%c0, %c0_0] : memref<8x4xf32, #tpu.memory_space<vmem>>, vector<8x4xf32>
    %c0_1 = arith.constant 0 : index
    %c0_2 = arith.constant 0 : index
    %1 = vector.load %arg2[%c0_1, %c0_2] : memref<8x1xi32, #tpu.memory_space<vmem>>, vector<8x1xi32>
    %cst = arith.constant dense<0xFF800000> : vector<8xf32>
    %2 = vector.multi_reduction <maximumf>, %0, %cst [1] : vector<8x4xf32> to vector<8xf32>
    %3 = vector.shape_cast %2 : vector<8xf32> to vector<8x1xf32>
    %4 = vector.broadcast %3 : vector<8x1xf32> to vector<8x4xf32>
    %5 = arith.subf %0, %4 : vector<8x4xf32>
    %6 = math.exp %5 : vector<8x4xf32>
    %cst_3 = arith.constant dense<0.000000e+00> : vector<8xf32>
    %7 = vector.multi_reduction <add>, %6, %cst_3 [1] : vector<8x4xf32> to vector<8xf32>
    %8 = vector.shape_cast %7 : vector<8xf32> to vector<8x1xf32>
    %9 = math.log %8 : vector<8x1xf32>
    %10 = arith.addf %3, %9 : vector<8x1xf32>
    %11 = tpu.iota {dimensions = array<i32: 1>} : vector<8x4xi32>
    %12 = vector.broadcast %1 : vector<8x1xi32> to vector<8x4xi32>
    %13 = arith.cmpi eq, %11, %12 : vector<8x4xi32>
    %cst_4 = arith.constant 0.000000e+00 : f32
    %14 = vector.broadcast %cst_4 : f32 to vector<8x4xf32>
    %15 = arith.select %13, %0, %14 : vector<8x4xi1>, vector<8x4xf32>
    %cst_5 = arith.constant dense<0.000000e+00> : vector<8xf32>
    %16 = vector.multi_reduction <add>, %15, %cst_5 [1] : vector<8x4xf32> to vector<8xf32>
    %17 = vector.shape_cast %16 : vector<8xf32> to vector<8x1xf32>
    %18 = arith.subf %10, %17 : vector<8x1xf32>
    %cst_6 = arith.constant 0.000000e+00 : f32
    %19 = vector.broadcast %cst_6 : f32 to vector<8x1xf32>
    %20 = arith.subf %19, %18 : vector<8x1xf32>
    %21 = math.exp %20 : vector<8x1xf32>
    %cst_7 = arith.constant 1.000000e+00 : f32
    %22 = vector.broadcast %cst_7 : f32 to vector<8x1xf32>
    %23 = arith.subf %22, %21 : vector<8x1xf32>
    %cst_8 = arith.constant 2.500000e-01 : f32
    %24 = vector.broadcast %cst_8 : f32 to vector<8x1xf32>
    %25 = arith.mulf %24, %23 : vector<8x1xf32>
    %26 = arith.mulf %25, %23 : vector<8x1xf32>
    %27 = arith.mulf %26, %18 : vector<8x1xf32>
    %28 = vector.shape_cast %27 : vector<8x1xf32> to vector<1x8x1xf32>
    %cst_9 = arith.constant dense<0.000000e+00> : vector<1xf32>
    %29 = vector.multi_reduction <add>, %28, %cst_9 [1, 2] : vector<1x8x1xf32> to vector<1xf32>
    %30 = vector.shape_cast %29 : vector<1xf32> to vector<1x1x1xf32>
    %31 = vector.extract %30[0, 0, 0] : f32 from vector<1x1x1xf32>
    %32 = vector.broadcast %31 : f32 to vector<1x1x128xf32>
    %c0_10 = arith.constant 0 : index
    %c0_11 = arith.constant 0 : index
    %c0_12 = arith.constant 0 : index
    %33 = vector.load %arg3[%c0_10, %c0_11, %c0_12] : memref<1x1x128xf32, #tpu.memory_space<vmem>>, vector<1x1x128xf32>
    tpu.vector_store %arg3[%c0_10, %c0_11, %c0_12], %32 {strides = array<i32>} : memref<1x1x128xf32, #tpu.memory_space<vmem>>, vector<1x1x128xf32>,
    return
  }
  func.func @transform_0(%arg0: i32) -> (i32, i32) {
    %c0_i32 = arith.constant 0 : i32
    %c0_i32_0 = arith.constant 0 : i32
    return %arg0, %c0_i32 : i32, i32
  }
  func.func @transform_1(%arg0: i32) -> (i32, i32) {
    %c0_i32 = arith.constant 0 : i32
    %c0_i32_0 = arith.constant 0 : i32
    return %arg0, %c0_i32 : i32, i32
  }
  func.func @transform_2(%arg0: i32) -> (i32, i32, i32) {
    %c0_i32 = arith.constant 0 : i32
    %c0_i32_0 = arith.constant 0 : i32
    %c0_i32_1 = arith.constant 0 : i32
    return %arg0, %c0_i32, %c0_i32_0 : i32, i32, i32
  }
}

</mosaic_0001>

<bundles_post_ra>
// kernel: tpu_custom_call.1
= control target key start
LH: loop header
LB: loop body
LE: loop exit
PB: predicated region body
PF: predicated region fallthrough
CT: control target
= control target key end

     0   :  { %vm14_vm0 = vcmask 31744   ;;  %s145_s0 = inlined_call_operand.vmem [shape: f32[8,4], index: 0, kind: input, shape index: {}]   ;;  %s146_s1 = inlined_call_operand.vmem [shape: s32[8,1], index: 1, kind: input, shape index: {}]   ;;  %s147_s2 = inlined_call_operand.hbm [shape: f32[1,1,128], index: 2, kind: output, shape index: {}]  }
   0x1   :  { %v12_v0 = vld [vmem:[%s145_s0] sm:$0xff] }
   0x2   :  { %7 = vsyncpa [#allocation3], 0  ;;  %v15_v1 = vsel %vm14_vm0, %v12_v0, -inf  ;;  %v107_v2 = vmov 0   ;;  %v13_v3 = vld [vmem:[%s146_s1] sm:$0xff]  ;;  %v27_v7 = vlaneseq  ;;  %vm45_vm2 = vcmask 7168  }
   0x3   :  { %76 = vset.pattern.permute.xlu0 %v107_v2  ;;  %s108_s0 = smov [#allocation2]  }
   0x4   :  { %16 = vmax.xlane.f32.xlu0 %v15_v1  ;;  %v28_v8 = vand.u32 127, %v27_v7  ;;  %s64_s1 = sshll.u32 %s108_s0, 4  ;;  %s65_s1 = int_to_ptr.vmem [resolvable:$true] %s64_s1 }
   0x5   :  { %s83_s14 = scalar_lea.vmem %s65_s1, 16  ;;  %s87_s15 = scalar_lea.vmem %s65_s1, 32 }
   0x6   :  { %p84_p0 = scmp.ne.s32.totalorder %s65_s1, %s83_s14  ;;  %p88_p1 = scmp.lt.s32.totalorder %s65_s1, %s65_s1 }
   0x7   :  { %p89_p2 = scmp.lt.s32.totalorder %s87_s15, %s83_s14 }
   0x9   :  { %p90_p3 = por %p89_p2, %p88_p1 }
   0xb   :  { %p91_p4 = pnand %p90_p3, %p84_p0 }
  0x1a   :  { %30 = vperm.xlu0 %76, %v13_v3  }
  0x91   :  { %v17_v4 = vpop.xlane.xlu0 %16 }
  0x92   :  { %v18_v5 = vsub.f32 %v12_v0, %v17_v4 }
  0x94   :  { %v19_v6 = vmul.f32 1.442695, %v18_v5 }
  0x96   :  { %77 = vpow2.f32 %v19_v6 }
  0x99   :  { %v31_v9 = vpop.permute.xlu0 %30 }
  0x9a   :  { %vm32_vm1 = vcmp.eq.s32.totalorder %v28_v8, %v31_v9 }
  0x9b   :  { %v33_v11 = vsel %vm32_vm1, %v12_v0, 0.0 }
  0x9c   :  { %v34_v13 = vsel %vm14_vm0, %v33_v11, 0.0 }
  0xa0   :  { %v78_v10 = vpop.eup %77 }
  0xa1   :  { %v21_v12 = vsel %vm14_vm0, %v78_v10, 0.0 }
  0xa2   :  { %22 = vadd.xlane.f32.xlu1 %v21_v12 }
  0xa6   :  { %35 = vadd.xlane.f32.xlu1 %v34_v13 }
 0x12f   :  { %v23_v14 = vpop.xlane.xlu1 %22 }
 0x130   :  { %79 = vlog2.f32 %v23_v14 }
 0x133   :  { %v36_v17 = vpop.xlane.xlu1 %35 }
 0x13a   :  { %v80_v15 = vpop.eup %79 }
 0x13b   :  { %v25_v16 = vmul.f32 0.6931472, %v80_v15 }
 0x13d   :  { %v26_v18 = vadd.f32 %v25_v16, %v17_v4 }
 0x13f   :  { %v37_v19 = vsub.f32 %v26_v18, %v36_v17 }
 0x141   :  { %v38_v20 = vsub.f32 0.0, %v37_v19 }
 0x143   :  { %v39_v21 = vmul.f32 1.442695, %v38_v20 }
 0x145   :  { %81 = vpow2.f32 %v39_v21 }
 0x14f   :  { %v82_v22 = vpop.eup %81 }
 0x150   :  { %v41_v23 = vsub.f32 1.0, %v82_v22 }
 0x152   :  { %v42_v24 = vmul.f32 0.25, %v41_v23 }
 0x154   :  { %v43_v25 = vmul.f32 %v42_v24, %v41_v23 }
 0x156   :  { %v44_v26 = vmul.f32 %v43_v25, %v37_v19 }
 0x158   :  { %v46_v27 = vsel %vm45_vm2, %v44_v26, 0.0 }
 0x159   :  { %47 = vadd.xlane.f32.xlu1 %v46_v27 }
 0x1e6   :  { %v48_v28 = vpop.xlane.xlu1 %47 }
 0x1e7   :  { %v49_v29 = vrot.slane %v48_v28, 4 }
 0x1e9   :  { %v50_v30 = vadd.f32 %v49_v29, %v48_v28 }
 0x1eb   :  { %v51_v31 = vrot.slane %v50_v30, 2 }
 0x1ed   :  { %v52_v32 = vadd.f32 %v51_v31, %v50_v30 }
 0x1ef   :  { %v53_v33 = vrot.slane %v52_v32, 1 }
 0x1f1   :  { %v54_v34 = vadd.f32 %v53_v33, %v52_v32 }
 0x1f3   :  { %72 = vpush %v54_v34 }
 0x224   :  { %s73_s13 = spop %72 }
 0x225   :  { %v56_v35 = vstv %s73_s13 }
 0x226   :  { %57 = vst [vmem:[#allocation2] sm:$0x1] %v56_v35 }
 0x227   :  { %94 = shalt.err (!%p91_p4)
}
 0x228   :  { %s95_s18 = scalar_lea.hbm %s147_s2, 16 }
 0x229   :  { %p96_p5 = scmp.ne.s32.totalorder %s147_s2, %s95_s18  ;;  %p99_p6 = scmp.lt.u32.totalorder %s95_s18, %s147_s2 }
 0x22b   :  { %p101_p7 = pnand %p99_p6, %p96_p5 }
 0x22d   :  { %104 = shalt.err (!%p101_p7)
}
 0x22e   :  { %67 = dma.vmem_to_hbm [thread:$0]  %s65_s1, 16, %s147_s2, [#allocation3]  }
 0x22f   :  { %105 = dma.done.wait [#allocation3], 16  }
 0x230   :  { %106 = vsyncadd [#allocation3], 4294967280 }
 0x231   :  { %71 = vsyncpa [#allocation3], 1 }

</bundles_post_ra>
